<compile_context>
chip_gen: v7x
topology: tpu7x:2x2x1
jax: 0.10.0
libtpu: 0.0.40
codegen_flags: <defaults>
</compile_context>

<pallas_src>
import jax
import jax.numpy as jnp
from jax.experimental import pallas as pl
from jax.experimental.pallas import tpu as pltpu


def _round_up(x, m):
    return ((x + m - 1) // m) * m


# -----------------------------------------------------------------------------
# Pallas kernel: fused LoRA double-matmul on pre-transposed weights
# -----------------------------------------------------------------------------
def _lora_kernel(x_ref, wa_t_ref, ba_ref, wb_t_ref, bb_ref, o_ref):
    # x_ref    : (tm, H_in)   native dtype (row tile)
    # wa_t_ref : (H_in, r)    native dtype (pre-transposed, grid-invariant)
    # ba_ref   : (1, r)       f32
    # wb_t_ref : (r, tn)      native dtype (pre-transposed, lane-padded col tile)
    # bb_ref   : (1, tn)      f32
    # o_ref    : (tm, tn)
    h = jnp.dot(x_ref[...], wa_t_ref[...],
                preferred_element_type=jnp.float32) + ba_ref[...]
    o = jnp.dot(h.astype(wb_t_ref.dtype), wb_t_ref[...],
                preferred_element_type=jnp.float32) + bb_ref[...]
    o_ref[...] = o.astype(o_ref.dtype)


def lora_forward(x, w_a, b_a, w_b, b_b, *, tm=None, tn=None):
    """Fused LoRA forward.  x: [..., H_in] -> [..., H_out].

    w_a: (r, H_in), b_a: (r,), w_b: (H_out, r), b_b: (H_out,).
    """
    orig_shape = x.shape
    h_in = orig_shape[-1]
    r = w_a.shape[0]
    h_out = w_b.shape[0]

    dt = x.dtype
    bytes_per = jnp.dtype(dt).itemsize

    x2d = x.reshape(-1, h_in)
    m = x2d.shape[0]

    # ---- tile selection (lane-dense output, big row tiles) ------------------
    row_g = 8 if bytes_per >= 4 else 16          # sublane granularity
    if tm is None:
        tm = min(512, _round_up(m, row_g))       # amortize per-grid-step cost
    tm = max(row_g, _round_up(tm, row_g))
    m_pad = _round_up(m, tm)

    if tn is None:
        tn = min(_round_up(h_out, 128), 2048)    # bounded, multiple of 128
    tn = _round_up(tn, 128)
    h_out_pad = _round_up(h_out, tn)

    # ---- one-time wrapper-side prep (no per-step work in the kernel) --------
    if m_pad != m:
        x2d = jnp.pad(x2d, ((0, m_pad - m), (0, 0)))

    wa_t = w_a.T.astype(dt)                      # (H_in, r)
    wb_t = w_b.T.astype(dt)                      # (r, H_out)
    if h_out_pad != h_out:
        wb_t = jnp.pad(wb_t, ((0, 0), (0, h_out_pad - h_out)))

    ba2d = b_a.reshape(1, r).astype(jnp.float32)
    bb2d = b_b.reshape(1, h_out).astype(jnp.float32)
    if h_out_pad != h_out:
        bb2d = jnp.pad(bb2d, ((0, 0), (0, h_out_pad - h_out)))

    grid = (m_pad // tm, h_out_pad // tn)

    # ---- cost estimate + VMEM sizing (safe on 64 MiB v7x) --------------------
    flops = int(2 * m_pad * r * (h_in + h_out_pad))
    bytes_accessed = int(
        (m_pad * h_in + m_pad * h_out_pad) * bytes_per
        + (wa_t.size + wb_t.size) * bytes_per
        + (ba2d.size + bb2d.size) * 4)
    cost = pl.CostEstimate(flops=flops, transcendentals=0,
                           bytes_accessed=bytes_accessed)

    vmem_need = (2 * (tm * h_in + tm * tn) * bytes_per        # x / out dbl-buf
                 + 2 * (h_in * r + r * tn) * bytes_per        # weights dbl-buf
                 + 2 * (r + tn) * 4                           # biases
                 + (1 << 20))                                 # headroom
    vmem_limit = int(min(64 << 20, max(32 << 20, int(vmem_need * 1.5))))

    out = pl.pallas_call(
        _lora_kernel,
        out_shape=jax.ShapeDtypeStruct((m_pad, h_out_pad), dt),
        grid_spec=pltpu.PrefetchScalarGridSpec(
            num_scalar_prefetch=0,
            grid=grid,
            in_specs=[
                pl.BlockSpec((tm, h_in), lambda i, j: (i, 0)),   # x row tile
                pl.BlockSpec((h_in, r), lambda i, j: (0, 0)),    # W_a^T (grid-invariant)
                pl.BlockSpec((1, r), lambda i, j: (0, 0)),       # b_a
                pl.BlockSpec((r, tn), lambda i, j: (0, j)),      # W_b^T column tile
                pl.BlockSpec((1, tn), lambda i, j: (0, j)),      # b_b column tile
            ],
            out_specs=pl.BlockSpec((tm, tn), lambda i, j: (i, j)),
        ),
        compiler_params=pltpu.CompilerParams(
            dimension_semantics=("parallel", "parallel"),
            vmem_limit_bytes=vmem_limit),
        cost_estimate=cost,
    )(x2d, wa_t, ba2d, wb_t, bb2d)

    out = out[:m, :h_out]
    return out.reshape(orig_shape[:-1] + (h_out,))


# -----------------------------------------------------------------------------
# Gumbel super-net weight sampling (sample_lora), fused to a per-rank scaling:
#   sum_k g_k * (mask_k * W) == (sum_k g_k * mask_k) * W
# so no stacked (K, r, H_in)/(K, H_out, r) intermediates are materialized.
# The .detach() on the LoRA_b branch is mirrored via stop_gradient.
# -----------------------------------------------------------------------------
def sample_lora_weights(w_a, w_b, gumbel_weights, candidate_dims, dtype=None):
    r = w_a.shape[0]
    dtype = dtype or w_a.dtype
    cds = jnp.asarray(candidate_dims)
    rank_ids = jnp.arange(r)
    mask = (rank_ids[None, :] < cds[:, None]).astype(jnp.float32)   # (K, r)
    g = gumbel_weights.astype(jnp.float32)                          # (K,)
    rank_scale_a = g @ mask                                         # (r,)
    rank_scale_b = jax.lax.stop_gradient(g) @ mask                  # detach() on b
    w_a_s = (rank_scale_a[:, None] * w_a.astype(jnp.float32)).astype(dtype)
    w_b_s = (rank_scale_b[None, :] * w_b.astype(jnp.float32)).astype(dtype)
    return w_a_s, w_b_s


def lora_parallel_layer_forward(x, params, gumbel_weights=None,
                                candidate_dims=(1, 4, 8),
                                fix_weight=None, retrain_flag=False):
    """Mirror of LoRA_ParallelLayer.forward (dropout=0 / eval mode).

    params = (w_a, b_a, w_b, b_b) with the nn.Linear layouts:
      w_a: (r, H_in), b_a: (r,), w_b: (H_out, r), b_b: (H_out,).
    """
    w_a, b_a, w_b, b_b = params
    r = w_a.shape[0]
    h_out = w_b.shape[0]
    zero_ba = jnp.zeros((r,), jnp.float32)
    zero_bb = jnp.zeros((h_out,), jnp.float32)

    # --- architecture decisions (mirrors freeze_arch): static Python choices --
    binary_choice, dim_choice = 1, None
    if fix_weight is not None:
        binary_w = fix_weight.get('binary', None)
        dim_w = fix_weight['dim']
        binary_choice = int(jnp.argmax(binary_w)) if binary_w is not None else 1
        dim_choice = candidate_dims[int(jnp.argmax(dim_w))]

    # --- retrain path: sliced-rank Linear layers, with biases ----------------
    if retrain_flag and gumbel_weights is None:
        if fix_weight is None or (binary_choice == 1 and dim_choice != 0):
            d = dim_choice if dim_choice is not None else r
            return lora_forward(x, w_a[:d, :], b_a[:d], w_b[:, :d], b_b)
        return 0  # module returns the scalar 0 when the LoRA branch is disabled

    # --- gumbel super-net path: F.linear with sampled weights, no bias -------
    if gumbel_weights is not None:
        w_a_s, w_b_s = sample_lora_weights(w_a, w_b, gumbel_weights,
                                           candidate_dims, dtype=x.dtype)
        return lora_forward(x, w_a_s, zero_ba, w_b_s, zero_bb)

    # --- frozen-arch path: sliced weights, F.linear (no bias) ----------------
    if fix_weight is not None:
        if binary_choice == 1:
            d = dim_choice
            return lora_forward(x, w_a[:d, :], zero_ba[:d], w_b[:, :d], zero_bb)
        return 0

    # --- default path: LoRA_b(LoRA_a(x)) with nn.Linear biases ---------------
    # TODO(synk): LoRA_dropout with p>0 in training mode is not modeled
    # (default p=0 / eval -> identity).
    return lora_forward(x, w_a, b_a, w_b, b_b)


# -----------------------------------------------------------------------------
if __name__ == "__main__":
    key = jax.random.PRNGKey(0)
    k_x, k_wa, k_ba, k_wb, k_bb, k_g, k_x2 = jax.random.split(key, 7)

    B, S, H_IN, H_OUT, R = 2, 8, 32, 32, 8       # LoRA_dim = 8
    candidate_dims = (1, 4, 8)

    x = jax.random.normal(k_x, (B, S, H_IN), dtype=jnp.float32)
    w_a = jax.random.normal(k_wa, (R, H_IN), dtype=jnp.float32) * 0.1
    b_a = jax.random.normal(k_ba, (R,), dtype=jnp.float32) * 0.1
    w_b = jax.random.normal(k_wb, (H_OUT, R), dtype=jnp.float32) * 0.1
    b_b = jax.random.normal(k_bb, (H_OUT,), dtype=jnp.float32) * 0.1
    params = (w_a, b_a, w_b, b_b)

    # ---- default path: LoRA_b(LoRA_a(x)) ----
    out = lora_parallel_layer_forward(x, params)
    out = jax.block_until_ready(out)
    ref = (x.reshape(-1, H_IN) @ w_a.T + b_a) @ w_b.T + b_b
    ref = ref.reshape(B, S, H_OUT)
    assert jnp.allclose(out, ref, atol=1e-5, rtol=1e-5), "default path mismatch"

    # ---- default path with a ragged row count (exercises the pad/slice path) ----
    x_rag = jax.random.normal(k_x2, (B, S - 1, H_IN), dtype=jnp.float32)
    out_r = jax.block_until_ready(lora_parallel_layer_forward(x_rag, params))
    ref_r = ((x_rag.reshape(-1, H_IN) @ w_a.T + b_a) @ w_b.T + b_b
             ).reshape(B, S - 1, H_OUT)
    assert jnp.allclose(out_r, ref_r, atol=1e-5, rtol=1e-5), "ragged path mismatch"

    # ---- gumbel super-net path ----
    gumbel = jax.nn.softmax(jax.random.normal(k_g, (len(candidate_dims),)))
    out_g = lora_parallel_layer_forward(x, params, gumbel_weights=gumbel,
                                        candidate_dims=candidate_dims)
    out_g = jax.block_until_ready(out_g)
    w_a_s, w_b_s = sample_lora_weights(w_a, w_b, gumbel, candidate_dims)
    ref_g = ((x.reshape(-1, H_IN) @ w_a_s.T) @ w_b_s.T).reshape(B, S, H_OUT)
    assert jnp.allclose(out_g, ref_g, atol=1e-5, rtol=1e-5), "gumbel path mismatch"

    # ---- frozen-arch (fix_weight) path: sliced rank, no bias ----
    fix_weight = {'binary': jnp.asarray([0.2, 0.8]),   # choose LoRA branch on
                  'dim': jnp.asarray([0.1, 0.7, 0.2])} # choose rank 4
    out_f = lora_parallel_layer_forward(x, params, candidate_dims=candidate_dims,
                                        fix_weight=fix_weight)
    out_f = jax.block_until_ready(out_f)
    d = candidate_dims[int(jnp.argmax(fix_weight['dim']))]
    ref_f = ((x.reshape(-1, H_IN) @ w_a[:d, :].T) @ w_b[:, :d].T
             ).reshape(B, S, H_OUT)
    assert jnp.allclose(out_f, ref_f, atol=1e-5, rtol=1e-5), "fix_weight path mismatch"

    print("KERNEL_OK")
</pallas_src>

<mosaic_0001>
module attributes {stable_mosaic.version = 11 : i64} {
  func.func @_lora_kernel(%arg0: i32, %arg1: i32, %arg2: memref<16x32xf32, #tpu.memory_space<vmem>>, %arg3: memref<32x8xf32, #tpu.memory_space<vmem>>, %arg4: memref<1x8xf32, #tpu.memory_space<vmem>>, %arg5: memref<8x128xf32, #tpu.memory_space<vmem>>, %arg6: memref<1x128xf32, #tpu.memory_space<vmem>>, %arg7: memref<16x128xf32, #tpu.memory_space<vmem>>) attributes {dimension_semantics = [#tpu.dimension_semantics<parallel>, #tpu.dimension_semantics<parallel>], iteration_bounds = array<i64: 1, 1>, scalar_prefetch = 0 : i64, scratch_operands = 0 : i64, tpu.core_type = #tpu.core_type<tc>, window_params = [{transform_indices = @transform_0, window_bounds = array<i64: 16, 32>}, {pipeline_mode = #tpu.pipeline_mode<synchronous>, transform_indices = @transform_1, window_bounds = array<i64: 32, 8>}, {pipeline_mode = #tpu.pipeline_mode<synchronous>, transform_indices = @transform_2, window_bounds = array<i64: 1, 8>}, {transform_indices = @transform_3, window_bounds = array<i64: 8, 128>}, {transform_indices = @transform_4, window_bounds = array<i64: 1, 128>}, {transform_indices = @transform_5, window_bounds = array<i64: 16, 128>}]} {
    %c0 = arith.constant 0 : index
    %c0_0 = arith.constant 0 : index
    %0 = vector.load %arg2[%c0, %c0_0] : memref<16x32xf32, #tpu.memory_space<vmem>>, vector<16x32xf32>
    %c0_1 = arith.constant 0 : index
    %c0_2 = arith.constant 0 : index
    %1 = vector.load %arg3[%c0_1, %c0_2] : memref<32x8xf32, #tpu.memory_space<vmem>>, vector<32x8xf32>
    %cst = arith.constant dense<0.000000e+00> : vector<16x8xf32>
    %2 = tpu.matmul %0, %1, %cst {dimension_numbers = #tpu.dot_dimension_numbers<[1], [0], [0], [1], [0, 0, 1, 1], [], []>} : vector<16x32xf32>, vector<32x8xf32>, vector<16x8xf32> -> vector<16x8xf32>
    %c0_3 = arith.constant 0 : index
    %c0_4 = arith.constant 0 : index
    %3 = vector.load %arg4[%c0_3, %c0_4] : memref<1x8xf32, #tpu.memory_space<vmem>>, vector<1x8xf32>
    %4 = vector.broadcast %3 : vector<1x8xf32> to vector<16x8xf32>
    %5 = arith.addf %2, %4 : vector<16x8xf32>
    %c0_5 = arith.constant 0 : index
    %c0_6 = arith.constant 0 : index
    %6 = vector.load %arg5[%c0_5, %c0_6] : memref<8x128xf32, #tpu.memory_space<vmem>>, vector<8x128xf32>
    %cst_7 = arith.constant dense<0.000000e+00> : vector<16x128xf32>
    %7 = tpu.matmul %5, %6, %cst_7 {dimension_numbers = #tpu.dot_dimension_numbers<[1], [0], [0], [1], [0, 0, 1, 1], [], []>} : vector<16x8xf32>, vector<8x128xf32>, vector<16x128xf32> -> vector<16x128xf32>
    %c0_8 = arith.constant 0 : index
    %c0_9 = arith.constant 0 : index
    %8 = vector.load %arg6[%c0_8, %c0_9] : memref<1x128xf32, #tpu.memory_space<vmem>>, vector<1x128xf32>
    %9 = vector.broadcast %8 : vector<1x128xf32> to vector<16x128xf32>
    %10 = arith.addf %7, %9 : vector<16x128xf32>
    %c0_10 = arith.constant 0 : index
    %c0_11 = arith.constant 0 : index
    %11 = vector.load %arg7[%c0_10, %c0_11] : memref<16x128xf32, #tpu.memory_space<vmem>>, vector<16x128xf32>
    tpu.vector_store %arg7[%c0_10, %c0_11], %10 {strides = array<i32>} : memref<16x128xf32, #tpu.memory_space<vmem>>, vector<16x128xf32>,
    return
  }
  func.func @transform_0(%arg0: i32, %arg1: i32) -> (i32, i32) {
    %c0_i32 = arith.constant 0 : i32
    %c0_i32_0 = arith.constant 0 : i32
    return %arg0, %c0_i32 : i32, i32
  }
  func.func @transform_1(%arg0: i32, %arg1: i32) -> (i32, i32) {
    %c0_i32 = arith.constant 0 : i32
    %c0_i32_0 = arith.constant 0 : i32
    %c0_i32_1 = arith.constant 0 : i32
    return %c0_i32, %c0_i32_0 : i32, i32
  }
  func.func @transform_2(%arg0: i32, %arg1: i32) -> (i32, i32) {
    %c0_i32 = arith.constant 0 : i32
    %c0_i32_0 = arith.constant 0 : i32
    %c0_i32_1 = arith.constant 0 : i32
    return %c0_i32, %c0_i32_0 : i32, i32
  }
  func.func @transform_3(%arg0: i32, %arg1: i32) -> (i32, i32) {
    %c0_i32 = arith.constant 0 : i32
    %c0_i32_0 = arith.constant 0 : i32
    return %c0_i32, %arg1 : i32, i32
  }
  func.func @transform_4(%arg0: i32, %arg1: i32) -> (i32, i32) {
    %c0_i32 = arith.constant 0 : i32
    %c0_i32_0 = arith.constant 0 : i32
    return %c0_i32, %arg1 : i32, i32
  }
  func.func @transform_5(%arg0: i32, %arg1: i32) -> (i32, i32) {
    %c0_i32 = arith.constant 0 : i32
    return %arg0, %arg1 : i32, i32
  }
}

</mosaic_0001>

<bundles_post_ra>
// kernel: tpu_custom_call.1
= control target key start
LH: loop header
LB: loop body
LE: loop exit
PB: predicated region body
PF: predicated region fallthrough
CT: control target
= control target key end

     0   :  { %vm34_vm0 = vcmask 261120   ;;  %s362_s0 = inlined_call_operand.vmem [shape: f32[16,32], index: 0, kind: input, shape index: {}]   ;;  %s363_s1 = inlined_call_operand.vmem [shape: f32[32,8], index: 1, kind: input, shape index: {}]   ;;  %s364_s2 = inlined_call_operand.vmem [shape: f32[1,8], index: 2, kind: input, shape index: {}]   ;;  %s365_s3 = inlined_call_operand.vmem [shape: f32[8,128], index: 3, kind: input, shape index: {}]   ;;  %s366_s4 = inlined_call_operand.vmem [shape: f32[1,128], index: 4, kind: input, shape index: {}]   ;;  %s367_s5 = inlined_call_operand.hbm [shape: f32[16,128], index: 5, kind: output, shape index: {}]  }
   0x1   :  { %v23_v0 = vld [vmem:[%s363_s1] sm:$0xff]  ;;  %v24_v1 = vld [vmem:[%s363_s1 + $0x8] sm:$0xff]  ;;  %v25_v2 = vld [vmem:[%s363_s1 + $0x10] sm:$0xff] }
   0x2   :  { %v255_v3 = vpack.c.bf16 %v24_v1, %v23_v0  ;;  %v26_v4 = vld [vmem:[%s363_s1 + $0x18] sm:$0xff]  ;;  %v21_v5 = vld [vmem:[%s362_s0] sm:$0xff] }
   0x3   :  { %v259_v6 = vpack.c.bf16 %v26_v4, %v25_v2  ;;  %247 = vmatprep.mubr.msk.f32.mxu0 %vm34_vm0, %v21_v5 }
   0x4   :  { %10 = vsyncpa [#allocation3], 0  ;;  %256 = vmatprep.subr.bf16.mxu0 %v255_v3  ;;  %v22_v7 = vld [vmem:[%s362_s0 + $0x8] sm:$0xff]  ;;  %v116_v8 = vld [vmem:[%s365_s3] sm:$0xff]  ;;  %vm124_vm1 = vcmask 64512   ;;  %s290_s9 = smov [#allocation2]  }
   0x5   :  { %258 = vmatpush3.bf16.msra.mxu0 %v255_v3  ;;  %250 = vmatprep.subr.mxu1 %v116_v8  ;;  %v224_v9 = vld [vmem:[%s364_s2] ss:$0 sm:$0xff]  ;;  %s213_s10 = sshll.u32 %s290_s9, 4  ;;  %s214_s10 = int_to_ptr.vmem [resolvable:$true] %s213_s10 }
   0x6   :  { %260 = vmatprep.subr.bf16.mxu0 %v259_v6  ;;  %251 = vmatpush3.msra.mxu1 %v116_v8  ;;  %v227_v14 = vld [vmem:[%s366_s4] ss:$0 sm:$0xff]  ;;  %s266_s2 = scalar_lea.vmem %s214_s10, 256  ;;  %p271_p1 = scmp.lt.s32.totalorder %s214_s10, %s214_s10 }
   0x7   :  { %p267_p0 = scmp.ne.s32.totalorder %s214_s10, %s266_s2  ;;  %p272_p2 = scmp.lt.s32.totalorder %s266_s2, %s266_s2 }
   0x9   :  { %262 = vmatpush3.bf16.msra.mxu0 %v259_v6  ;;  %p273_p3 = por %p272_p2, %p271_p1 }
   0xb   :  { %p274_p4 = pnand %p273_p3, %p267_p0 }
   0xc   :  { %248 = vmatmul.mubr.msk.f32.vlgmr.msra.gmra.mrb[0].mxu0 %vm34_vm0, %v22_v7 }
  0xdf   :  { %v249_v10 = vpop.f32.mrb[0].mxu0 }
  0xe0   :  { %v107_v11 = vpop.f32.mrb[1].mxu0  ;;  %v113_v13 = vadd.f32 %v249_v10, %v224_v9 }
  0xe1   :  { %v108_v12 = vadd.f32 %v224_v9, %v107_v11 }
  0xe3   :  { %252 = vmatprep.mubr.msk.f32.mxu1 %vm124_vm1, %v108_v12 }
  0xe4   :  { %253 = vmatmul.mubr.msk.f32.vlgmr.msra.gmra.mrb[0].mxu1 %vm124_vm1, %v113_v13 }
 0x1b7   :  { %v254_v15 = vpop.f32.mrb[0].mxu1 }
 0x1b8   :  { %v203_v16 = vadd.f32 %v254_v15, %v227_v14  ;;  %v197_v17 = vpop.f32.mrb[1].mxu1 }
 0x1b9   :  { %v198_v18 = vadd.f32 %v227_v14, %v197_v17 }
 0x1ba   :  { %207 = vst [vmem:[#allocation2 + $0x8] sm:$0xff] %v203_v16 }
 0x1bb   :  { %206 = vst [vmem:[#allocation2] sm:$0xff] %v198_v18 }
 0x1bc   :  { %277 = shalt.err (!%p274_p4)
}
 0x1bd   :  { %s278_s4 = scalar_lea.hbm %s367_s5, 256 }
 0x1be   :  { %p279_p5 = scmp.ne.s32.totalorder %s367_s5, %s278_s4  ;;  %p282_p6 = scmp.lt.u32.totalorder %s278_s4, %s367_s5 }
 0x1c0   :  { %p284_p7 = pnand %p282_p6, %p279_p5 }
 0x1c2   :  { %287 = shalt.err (!%p284_p7)
}
 0x1c3   :  { %s291_s16 = smov 128   ;;  %s292_s17 = smov 8  }
 0x1c4   :  { %219 = dma.vmem_to_hbm [thread:$0]  %s214_s10, 256, %s367_s5, [#allocation3], %s291_s16, %s291_s16, %s292_s17  }
 0x1c5   :  { %288 = dma.done.wait [#allocation3], 256  }
 0x1c6   :  { %289 = vsyncadd [#allocation3], 4294967040 }
 0x1c7   :  { %223 = vsyncpa [#allocation3], 1 }

</bundles_post_ra>
